<compile_context>
chip_gen: v5e
topology: v5e:2x2
jax: 0.10.0
libtpu: 0.0.40
codegen_flags: <defaults>
</compile_context>

<pallas_src>
import functools

import jax
import jax.numpy as jnp
from jax.experimental import pallas as pl
from jax.experimental.pallas import tpu as pltpu


def _attn_readout_kernel(counts_ref, x_ref, vb_ref, wu_ref, we_ref, o_ref):
    # counts_ref: [Bp]         int32 (SMEM, scalar-prefetched) valid nodes per graph
    # x_ref:      [TB, S, D]   bf16 padded node features
    # vb_ref:     [TB, 1, OHp] f32  hoisted fc_v(feat_v) + fc_u bias, all orders fused
    # wu_ref:     [D, OHp]     bf16 fused fc_u weight (order o -> columns o*H:(o+1)*H)
    # we_ref:     [OHp, O]     bf16 block-diagonal fc_e weights
    # o_ref:      [TB, O, D]   f32
    x = x_ref[...]
    vb = vb_ref[...]
    wu = wu_ref[...]
    we_mat = we_ref[...]

    TB, S, D = x.shape
    OHp = wu.shape[1]
    O = we_mat.shape[1]

    # Rebuild the per-graph validity mask from scalar-prefetched counts
    # (replaces the lane-sparse [TB, S, 1] f32 mask input and its DMA stream).
    b0 = pl.program_id(0) * TB
    iota_s = jax.lax.broadcasted_iota(jnp.int32, (1, S), 1)
    rows = [(iota_s < counts_ref[b0 + t]).astype(jnp.float32) for t in range(TB)]
    mask = rows[0] if TB == 1 else jnp.concatenate(rows, axis=0)   # [TB, S]
    mask = mask[:, :, None]                                        # [TB, S, 1]

    # Fused fc_u over all orders: one wide bf16 MXU matmul, f32 accumulation.
    u = jnp.dot(x.reshape(TB * S, D), wu,
                preferred_element_type=jnp.float32).reshape(TB, S, OHp)
    h = jax.nn.sigmoid(u + vb)                                     # f32

    # fc_e for all orders at once via the block-diagonal projection.
    # TODO(synk): if bundle dumps show these MXU pushes are the saturating slot
    # and H % 128 == 0, switch to (h * we_vec) + per-128-lane-block XLU sums.
    e = jnp.dot(h.astype(we_mat.dtype).reshape(TB * S, OHp), we_mat,
                preferred_element_type=jnp.float32).reshape(TB, S, O)

    # Masked per-graph softmax statistics (all in f32).
    e = jnp.where(mask > 0, e, jnp.float32(-1e30))
    m = jnp.max(e, axis=1, keepdims=True)                 # [TB, 1, O]
    p = jnp.exp(e - m) * mask                             # [TB, S, O], un-normalized
    denom = jnp.sum(p, axis=1)                            # [TB, O]

    # Weighted segment sum as a batched MXU contraction (K = S reduction on the
    # systolic array; no [TB, S, O, D] broadcast intermediate):
    #   rst_un[b, o, :] = sum_s p[b, s, o] * x[b, s, :]
    rst_un = jax.lax.dot_general(
        p.astype(x.dtype), x,
        dimension_numbers=(((1,), (1,)), ((0,), (0,))),
        preferred_element_type=jnp.float32)               # [TB, O, D]

    # Exact f32 normalization on O*D values; empty / padded graphs give 0 (not NaN).
    inv = 1.0 / jnp.maximum(denom, jnp.float32(1e-30))    # [TB, O]
    o_ref[...] = (rst_un * inv[:, :, None]).astype(o_ref.dtype)


@functools.partial(jax.jit, static_argnames=("tb",))
def attn_readout_pallas(feats_padded, feat_vs, counts, Wu, bu, Wv, we, *, tb=8):
    """feats_padded: [B, S, D] f32; feat_vs: [B, O, D] f32; counts: [B] int32;
    Wu, Wv: [O, D, H]; bu, we: [O, 1, H].  Returns [B, O, D] f32."""
    B, S, D = feats_padded.shape
    O = feat_vs.shape[1]
    H = Wu.shape[-1]
    OH = O * H
    OHp = ((OH + 127) // 128) * 128      # lane-align the fused hidden width

    # ---- tiny one-off host-side (XLA) preprocessing ----
    # Fused fc_u weight [D, O*H] (order o occupies columns o*H:(o+1)*H), lane-padded, bf16.
    wu_all = jnp.transpose(Wu, (1, 0, 2)).reshape(D, OH)
    wu_all = jnp.pad(wu_all, ((0, 0), (0, OHp - OH))).astype(jnp.bfloat16)
    # Hoisted fc_v + fc_u bias (kept f32): vb[b, 0, o*H + k] = feat_vs[b, o] @ Wv[o] + bu[o].
    vb = jnp.einsum('bod,odh->boh', feat_vs, Wv) + bu[:, 0, :][None]
    vb = jnp.pad(vb.reshape(B, 1, OH), ((0, 0), (0, 0), (0, OHp - OH))).astype(jnp.float32)
    # Block-diagonal fc_e weights: we_mat[o*H + k, p] = we[o, 0, k] * (o == p).
    we_mat = (we[:, 0, :, None] * jnp.eye(O, dtype=we.dtype)[:, None, :]).reshape(OH, O)
    we_mat = jnp.pad(we_mat, ((0, OHp - OH), (0, 0))).astype(jnp.bfloat16)

    # bf16 feats: halves HBM traffic and the per-step VMEM footprint; both MXU
    # dots accumulate in f32.
    x = feats_padded.astype(jnp.bfloat16)

    # Pad S to a multiple of 8 so the in-kernel (TB,S,*) reshapes stay layout-free.
    Sp = ((S + 7) // 8) * 8
    if Sp != S:
        x = jnp.pad(x, ((0, 0), (0, Sp - S), (0, 0)))

    # Batch TB graphs per grid step; pad the batch so the grid divides evenly.
    TB = min(tb, B)
    Bp = ((B + TB - 1) // TB) * TB
    if Bp != B:
        pad_b = Bp - B
        x = jnp.pad(x, ((0, pad_b), (0, 0), (0, 0)))
        vb = jnp.pad(vb, ((0, pad_b), (0, 0), (0, 0)))
        counts = jnp.pad(counts, (0, pad_b))      # padded graphs: count = 0 -> rst = 0
    counts = counts.astype(jnp.int32)

    # TODO(synk): per-generation tuning — v6e: grow tb and raise vmem_limit_bytes
    # toward ~100 MiB; v7x (64 MiB VMEM): halve tb or S-tile with online-softmax
    # accumulators and single-buffer the constant-index wu/we specs
    # (pipeline_mode=pl.Buffered(1)); v5e: pl.Buffered(3) on the feats spec.
    out = pl.pallas_call(
        _attn_readout_kernel,
        out_shape=jax.ShapeDtypeStruct((Bp, O, D), jnp.float32),
        grid_spec=pltpu.PrefetchScalarGridSpec(
            num_scalar_prefetch=1,                                   # counts -> SMEM
            grid=(Bp // TB,),
            in_specs=[
                pl.BlockSpec((TB, Sp, D), lambda b, c: (b, 0, 0)),   # feats (bf16, streamed once)
                pl.BlockSpec((TB, 1, OHp), lambda b, c: (b, 0, 0)),  # hoisted fc_v + bias
                pl.BlockSpec((D, OHp), lambda b, c: (0, 0)),         # fused Wu (resident)
                pl.BlockSpec((OHp, O), lambda b, c: (0, 0)),         # fc_e block-diag (resident)
            ],
            out_specs=pl.BlockSpec((TB, O, D), lambda b, c: (b, 0, 0)),
        ),
        compiler_params=pltpu.CompilerParams(
            dimension_semantics=("parallel",),
            vmem_limit_bytes=48 * 1024 * 1024),
    )(counts, x, vb, wu_all, we_mat)

    return out[:B]                      # [B, O, D]


def attn_readout_reference(feats_padded, feat_vs, counts, Wu, bu, Wv, we):
    """Pure-JAX f32 reference with identical semantics (for verification)."""
    B, S, D = feats_padded.shape
    O = feat_vs.shape[1]
    mask = (jnp.arange(S)[None, :, None] < counts[:, None, None]).astype(jnp.float32)
    outs = []
    for i in range(O):
        u = feats_padded @ Wu[i] + bu[i]               # [B, S, H]
        v = (feat_vs[:, i] @ Wv[i])[:, None, :]        # [B, 1, H]
        e = jnp.sum(jax.nn.sigmoid(u + v) * we[i], axis=-1, keepdims=True)
        e = jnp.where(mask > 0, e, -1e30)
        p = jnp.exp(e - jnp.max(e, axis=1, keepdims=True)) * mask
        alpha = p / jnp.sum(p, axis=1, keepdims=True)
        outs.append(jnp.sum(feats_padded * alpha, axis=1))
    return jnp.stack(outs, axis=1)                     # [B, O, D]


if __name__ == "__main__":
    # Small, deterministic synthetic configuration.
    B = 2          # number of graphs in the batch
    S = 8          # max nodes per graph (padded)
    D = 32         # input_dim
    H = 16         # hidden_dim
    O = 2          # order

    key = jax.random.PRNGKey(0)
    k = jax.random.split(key, 6)

    counts = jnp.array([8, 5], dtype=jnp.int32)        # valid nodes per graph
    # Padding slots intentionally left with random garbage: the kernel must
    # mask them out via the counts-derived mask.
    feats_padded = jax.random.normal(k[0], (B, S, D), dtype=jnp.float32)
    # feat_vs = features of the "last node" per graph, per order (host-side gather glue).
    feat_vs = jax.random.normal(k[1], (B, O, D), dtype=jnp.float32)

    # Deterministic parameter init (Linear layers from __init__).
    Wu = 0.1 * jax.random.normal(k[2], (O, D, H), dtype=jnp.float32)  # fc_u weight^T
    bu = 0.1 * jax.random.normal(k[3], (O, 1, H), dtype=jnp.float32)  # fc_u bias
    Wv = 0.1 * jax.random.normal(k[4], (O, D, H), dtype=jnp.float32)  # fc_v weight^T
    we = 0.1 * jax.random.normal(k[5], (O, 1, H), dtype=jnp.float32)  # fc_e weight

    # tb=1 -> a 2-step "parallel" grid so both v7x TensorCores get work.
    out = attn_readout_pallas(feats_padded, feat_vs, counts, Wu, bu, Wv, we, tb=1)
    out = jax.block_until_ready(out)

    ref = attn_readout_reference(feats_padded, feat_vs, counts, Wu, bu, Wv, we)
    assert out.shape == (B, O, D), out.shape
    # Tolerance reflects bf16 MXU inputs with f32 accumulation; the softmax
    # normalization itself is an exact f32 divide.  Structural errors would be
    # orders of magnitude larger than this bound.
    err = float(jnp.max(jnp.abs(out - ref)))
    assert jnp.allclose(out, ref, atol=5e-2, rtol=5e-2), err

    print("KERNEL_OK")
</pallas_src>

<mosaic_0001>
module attributes {stable_mosaic.version = 11 : i64} {
  func.func @_attn_readout_kernel(%arg0: i32, %arg1: memref<2xi32, #tpu.memory_space<smem>>, %arg2: memref<1x8x32xbf16, #tpu.memory_space<vmem>>, %arg3: memref<1x1x128xf32, #tpu.memory_space<vmem>>, %arg4: memref<32x128xbf16, #tpu.memory_space<vmem>>, %arg5: memref<128x2xbf16, #tpu.memory_space<vmem>>, %arg6: memref<1x2x32xf32, #tpu.memory_space<vmem>>) attributes {dimension_semantics = [#tpu.dimension_semantics<parallel>], iteration_bounds = array<i64: 2>, scalar_prefetch = 1 : i64, scratch_operands = 0 : i64, tpu.core_type = #tpu.core_type<tc>, window_params = [{transform_indices = @transform_0, window_bounds = array<i64: 1, 8, 32>}, {transform_indices = @transform_1, window_bounds = array<i64: 1, 1, 128>}, {pipeline_mode = #tpu.pipeline_mode<synchronous>, transform_indices = @transform_2, window_bounds = array<i64: 32, 128>}, {pipeline_mode = #tpu.pipeline_mode<synchronous>, transform_indices = @transform_3, window_bounds = array<i64: 128, 2>}, {transform_indices = @transform_4, window_bounds = array<i64: 1, 2, 32>}]} {
    %c0 = arith.constant 0 : index
    %c0_0 = arith.constant 0 : index
    %c0_1 = arith.constant 0 : index
    %0 = vector.load %arg2[%c0, %c0_0, %c0_1] : memref<1x8x32xbf16, #tpu.memory_space<vmem>>, vector<1x8x32xbf16>
    %c0_2 = arith.constant 0 : index
    %c0_3 = arith.constant 0 : index
    %c0_4 = arith.constant 0 : index
    %1 = vector.load %arg3[%c0_2, %c0_3, %c0_4] : memref<1x1x128xf32, #tpu.memory_space<vmem>>, vector<1x1x128xf32>
    %c0_5 = arith.constant 0 : index
    %c0_6 = arith.constant 0 : index
    %2 = vector.load %arg4[%c0_5, %c0_6] : memref<32x128xbf16, #tpu.memory_space<vmem>>, vector<32x128xbf16>
    %c0_7 = arith.constant 0 : index
    %c0_8 = arith.constant 0 : index
    %3 = vector.load %arg5[%c0_7, %c0_8] : memref<128x2xbf16, #tpu.memory_space<vmem>>, vector<128x2xbf16>
    %c1_i32 = arith.constant 1 : i32
    %4 = arith.muli %arg0, %c1_i32 : i32
    %5 = tpu.iota {dimensions = array<i32: 1>} : vector<1x8xi32>
    %c0_i32 = arith.constant 0 : i32
    %6 = arith.addi %4, %c0_i32 : i32
    %7 = arith.index_cast %6 : i32 to index
    %8 = memref.load %arg1[%7] : memref<2xi32, #tpu.memory_space<smem>>
    %9 = vector.broadcast %8 : i32 to vector<1x8xi32>
    %10 = arith.cmpi slt, %5, %9 : vector<1x8xi32>
    %11 = arith.extui %10 : vector<1x8xi1> to vector<1x8xi32>
    %12 = arith.sitofp %11 : vector<1x8xi32> to vector<1x8xf32>
    %13 = vector.shape_cast %12 : vector<1x8xf32> to vector<1x8x1xf32>
    %14 = vector.shape_cast %0 : vector<1x8x32xbf16> to vector<8x32xbf16>
    %cst = arith.constant dense<0.000000e+00> : vector<8x128xf32>
    %15 = tpu.matmul %14, %2, %cst {dimension_numbers = #tpu.dot_dimension_numbers<[1], [0], [0], [1], [0, 0, 1, 1], [], []>} : vector<8x32xbf16>, vector<32x128xbf16>, vector<8x128xf32> -> vector<8x128xf32>
    %16 = vector.shape_cast %15 : vector<8x128xf32> to vector<1x8x128xf32>
    %17 = vector.broadcast %1 : vector<1x1x128xf32> to vector<1x8x128xf32>
    %18 = arith.addf %16, %17 : vector<1x8x128xf32>
    %19 = arith.negf %18 : vector<1x8x128xf32>
    %20 = math.exp %19 : vector<1x8x128xf32>
    %cst_9 = arith.constant 1.000000e+00 : f32
    %21 = vector.broadcast %cst_9 : f32 to vector<1x8x128xf32>
    %22 = arith.addf %21, %20 : vector<1x8x128xf32>
    %23 = arith.divf %21, %22 : vector<1x8x128xf32>
    %24 = arith.truncf %23 : vector<1x8x128xf32> to vector<1x8x128xbf16>
    %25 = vector.shape_cast %24 : vector<1x8x128xbf16> to vector<8x128xbf16>
    %cst_10 = arith.constant dense<0.000000e+00> : vector<8x2xf32>
    %26 = tpu.matmul %25, %3, %cst_10 {dimension_numbers = #tpu.dot_dimension_numbers<[1], [0], [0], [1], [0, 0, 1, 1], [], []>} : vector<8x128xbf16>, vector<128x2xbf16>, vector<8x2xf32> -> vector<8x2xf32>
    %27 = vector.shape_cast %26 : vector<8x2xf32> to vector<1x8x2xf32>
    %cst_11 = arith.constant 0.000000e+00 : f32
    %28 = vector.broadcast %cst_11 : f32 to vector<1x8x1xf32>
    %29 = arith.cmpf ogt, %13, %28 : vector<1x8x1xf32>
    %cst_12 = arith.constant -1.000000e+30 : f32
    %30 = vector.shape_cast %29 : vector<1x8x1xi1> to vector<1x8x1xi1>
    %31 = vector.broadcast %30 : vector<1x8x1xi1> to vector<1x8x2xi1>
    %32 = vector.broadcast %cst_12 : f32 to vector<1x8x2xf32>
    %33 = arith.select %31, %27, %32 : vector<1x8x2xi1>, vector<1x8x2xf32>
    %cst_13 = arith.constant dense<0xFF800000> : vector<1x2xf32>
    %34 = vector.multi_reduction <maximumf>, %33, %cst_13 [1] : vector<1x8x2xf32> to vector<1x2xf32>
    %35 = vector.shape_cast %34 : vector<1x2xf32> to vector<1x1x2xf32>
    %36 = vector.broadcast %35 : vector<1x1x2xf32> to vector<1x8x2xf32>
    %37 = arith.subf %33, %36 : vector<1x8x2xf32>
    %38 = math.exp %37 : vector<1x8x2xf32>
    %39 = vector.broadcast %13 : vector<1x8x1xf32> to vector<1x8x2xf32>
    %40 = arith.mulf %38, %39 : vector<1x8x2xf32>
    %cst_14 = arith.constant dense<0.000000e+00> : vector<1x2xf32>
    %41 = vector.multi_reduction <add>, %40, %cst_14 [1] : vector<1x8x2xf32> to vector<1x2xf32>
    %42 = arith.truncf %40 : vector<1x8x2xf32> to vector<1x8x2xbf16>
    %cst_15 = arith.constant dense<0.000000e+00> : vector<1x2x32xf32>
    %43 = tpu.matmul %42, %0, %cst_15 {dimension_numbers = #tpu.dot_dimension_numbers<[1], [1], [2], [2], [0, 0, 0, 2, 1, 2], [0], [0]>} : vector<1x8x2xbf16>, vector<1x8x32xbf16>, vector<1x2x32xf32> -> vector<1x2x32xf32>
    %cst_16 = arith.constant 1.000000e-30 : f32
    %44 = vector.broadcast %cst_16 : f32 to vector<1x2xf32>
    %45 = arith.maximumf %41, %44 : vector<1x2xf32>
    %cst_17 = arith.constant 1.000000e+00 : f32
    %46 = vector.broadcast %cst_17 : f32 to vector<1x2xf32>
    %47 = arith.divf %46, %45 : vector<1x2xf32>
    %48 = vector.shape_cast %47 : vector<1x2xf32> to vector<1x2x1xf32>
    %49 = vector.broadcast %48 : vector<1x2x1xf32> to vector<1x2x32xf32>
    %50 = arith.mulf %43, %49 : vector<1x2x32xf32>
    %c0_18 = arith.constant 0 : index
    %c0_19 = arith.constant 0 : index
    %c0_20 = arith.constant 0 : index
    %51 = vector.load %arg6[%c0_18, %c0_19, %c0_20] : memref<1x2x32xf32, #tpu.memory_space<vmem>>, vector<1x2x32xf32>
    tpu.vector_store %arg6[%c0_18, %c0_19, %c0_20], %50 {strides = array<i32>} : memref<1x2x32xf32, #tpu.memory_space<vmem>>, vector<1x2x32xf32>,
    return
  }
  func.func @transform_0(%arg0: i32, %arg1: memref<2xi32, #tpu.memory_space<smem>>) -> (i32, i32, i32) {
    %c0_i32 = arith.constant 0 : i32
    %c0_i32_0 = arith.constant 0 : i32
    %c0_i32_1 = arith.constant 0 : i32
    return %arg0, %c0_i32, %c0_i32_0 : i32, i32, i32
  }
  func.func @transform_1(%arg0: i32, %arg1: memref<2xi32, #tpu.memory_space<smem>>) -> (i32, i32, i32) {
    %c0_i32 = arith.constant 0 : i32
    %c0_i32_0 = arith.constant 0 : i32
    %c0_i32_1 = arith.constant 0 : i32
    return %arg0, %c0_i32, %c0_i32_0 : i32, i32, i32
  }
  func.func @transform_2(%arg0: i32, %arg1: memref<2xi32, #tpu.memory_space<smem>>) -> (i32, i32) {
    %c0_i32 = arith.constant 0 : i32
    %c0_i32_0 = arith.constant 0 : i32
    %c0_i32_1 = arith.constant 0 : i32
    return %c0_i32, %c0_i32_0 : i32, i32
  }
  func.func @transform_3(%arg0: i32, %arg1: memref<2xi32, #tpu.memory_space<smem>>) -> (i32, i32) {
    %c0_i32 = arith.constant 0 : i32
    %c0_i32_0 = arith.constant 0 : i32
    %c0_i32_1 = arith.constant 0 : i32
    return %c0_i32, %c0_i32_0 : i32, i32
  }
  func.func @transform_4(%arg0: i32, %arg1: memref<2xi32, #tpu.memory_space<smem>>) -> (i32, i32, i32) {
    %c0_i32 = arith.constant 0 : i32
    %c0_i32_0 = arith.constant 0 : i32
    %c0_i32_1 = arith.constant 0 : i32
    return %arg0, %c0_i32, %c0_i32_0 : i32, i32, i32
  }
}

</mosaic_0001>

<bundles_post_ra>
// kernel: attn_readout_pallas.1
= control target key start
LH: loop header
LB: loop body
LE: loop exit
PB: predicated region body
PF: predicated region fallthrough
CT: control target
= control target key end

     0   :  { %s730_s21 = smov [#allocation3]   ;;  %s890_s0 = inlined_call_operand.vmem [shape: s32[2], index: 0, kind: input, shape index: {}]   ;;  %s891_s1 = inlined_call_operand.vmem [shape: bf16[2,8,32], index: 1, kind: input, shape index: {}]   ;;  %s892_s2 = inlined_call_operand.vmem [shape: f32[2,1,128], index: 2, kind: input, shape index: {}]   ;;  %s893_s3 = inlined_call_operand.vmem [shape: bf16[32,128], index: 3, kind: input, shape index: {}]   ;;  %s894_s4 = inlined_call_operand.vmem [shape: bf16[128,2], index: 4, kind: input, shape index: {}]   ;;  %s895_s5 = inlined_call_operand.hbm [shape: f32[2,2,32], index: 5, kind: output, shape index: {}]  }
   0x1   :  { %s11_s20 = sshll.u32 %s890_s0, 4  ;;  %s12_s20 = int_to_ptr.vmem [resolvable:$true] %s11_s20 }
   0x2   :  { %14 = dma.vmem_to_smem %s12_s20, 16, %s730_s21, [#allocation2] }
   0x3   :  { %708 = dma.done.wait [#allocation2], 16 }
   0x4   :  { %709 = vsyncadd [#allocation2], 4294967280 }
   0x5   :  { %17 = sfence }
   0x6   :  { %18 = vsyncpa [#allocation5], 0 }
   0x7   :  { %20 = vsyncpa [#allocation5 + $0x1], 0  ;;  %s765_s22 = smov 0   ;;  %s767_s23 = smov 0  }
   0x8   :  { %s769_s24 = smov 0   ;;  %s771_s25 = smov 0  }
   0x9 LB: > { %s786_s0 = sadd.s32 4294967295, %s728_s25   ;;  %s535_s26 = sadd.s32 4294967294, %s728_s25   ;;  %s728_s25 = sphi %s771_s25, %s901_s25   ;;  %s724_s24 = sphi %s769_s24, %s900_s24   ;;  %s720_s23 = sphi %s767_s23, %s899_s23   ;;  %s716_s22 = sphi %s765_s22, %s898_s22  }
   0xa   : > { %s790_s27 = sadd.s32 1, %s728_s25   ;;  %s127_s28 = sadd.s32 1, %s724_s24 }
   0xb   : > { %s124_s29 = ssub.s32 %s728_s25, %s790_s27  ;;  %p137_p0 = scmp.ne.s32.totalorder %s724_s24, %s720_s23 }
   0xc   : > { %p125_p1 = scmp.eq.s32.totalorder %s124_s29, 0  ;;  %p138_p2 = scmp.eq.s32.totalorder %s786_s0, 1 }
   0xd   : > { %p143_p3 = scmp.ne.s32.totalorder %s720_s23, %s716_s22  ;;  %p144_p4 = scmp.eq.s32.totalorder %s535_s26, 1 }
   0xe   : > { %s801_s30 = scalar_select %p125_p1, %s724_s24, %s127_s28  }
   0xf   : > { %p803_p5 = por %p138_p2, %p137_p0  ;;  %p807_p6 = por %p144_p4, %p143_p3 }
  0x10   : > { %p538_p7 = scmp.ge.s32.totalorder %s728_s25, 1  ;;  %p181_p8 = scmp.lt.s32.totalorder %s728_s25, 3 }
  0x12   : > { %p182_p9 = pnand %p538_p7, %p181_p8 }
  0x13   : > { %p209_p10 = scmp.lt.s32.totalorder (!%p182_p9), %s786_s0, 1  ;;  %s241_s20 = sld [smem:[#allocation3 + %s786_s0]] (!%p182_p9) }
  0x14   : > { %185 = sbr.rel (%p182_p9) target bundleno = 659 (0x293), region = 36  ;;  %s586_s21 = sshll.u32 (!%p182_p9), %s786_s0, 1 }
  0x15   : > { %s462_s8 = scalar_lea.hbm (!%p182_p9), %s895_s5, %s586_s21  ;;  %s684_s17 = scalar_lea.hbm (!%p182_p9), %s895_s5, 4 }
  0x16   : > { %s466_s11 = sshll.u32 (!%p182_p9), %s462_s8, 4  ;;  %s467_s11 = int_to_ptr.hbm [resolvable:$true] %s466_s11 }
  0x19   : > { %v590_v0 = vld [vmem:[%s893_s3 + $0x8] sm:$0xff]  ;;  %v589_v1 = vld [vmem:[%s893_s3] sm:$0xff]  ;;  %s210_s12 = scalar_select %p209_p10, %s786_s0, 1  ;;  %vm264_vm0 = vcmask 261120   ;;  %v598_v3 = vld [vmem:[%s894_s4 + $0x38] sm:$0xff]  ;;  %v239_v12 = vlaneseq  ;;  %v242_v17 = vstv %s241_s20  ;;  %v731_v20 = vmov 0.0  }
  0x1a   : > { %274 = vmatpush.bf16.msra.mxu0 %v590_v0  ;;  %353 = vmatpush.bf16.msra.mxu1 %v598_v3  ;;  %v597_v4 = vld [vmem:[%s894_s4 + $0x30] sm:$0xff]  ;;  %v596_v5 = vld [vmem:[%s894_s4 + $0x28] sm:$0xff]  ;;  %v595_v6 = vld [vmem:[%s894_s4 + $0x20] sm:$0xff]  ;;  %vm370_vm7 = vcmask 15360   ;;  %vm410_vm12 = vcmask 1043456   ;;  %vm406_vm13 = vcmask 64512  }
  0x1b   : > { %s540_s13 = sshll.u32 %s210_s12, 2  ;;  %s215_s16 = scalar_lea.vmem %s892_s2, %s210_s12  ;;  %v594_v7 = vld [vmem:[%s894_s4 + $0x18] sm:$0xff]  ;;  %v593_v8 = vld [vmem:[%s894_s4 + $0x10] sm:$0xff]  ;;  %v592_v9 = vld [vmem:[%s894_s4 + $0x8] sm:$0xff]  ;;  %v247_v15 = vshrl.u32 %v239_v12, 7  ;;  %v240_v16 = vand.u32 127, %v239_v12 }
  0x1c   : > { %s212_s19 = scalar_lea.vmem %s891_s1, %s540_s13  ;;  %v591_v10 = vld [vmem:[%s894_s4] sm:$0xff]  ;;  %vm449_vm14 = vcmask 254976   ;;  %s678_s13 = sshra.s32 %s467_s11, 4  ;;  %s679_s13 = int_to_ptr.hbm [resolvable:$true] %s678_s13 }
  0x1d   : > { %v827_v2 = vld [vmem:[%s212_s19] sm:$0xf]  ;;  %641 = vset.pattern.permute.xlu0 %v247_v15  ;;  %642 = vset.pattern.permute.xlu1 %v247_v15  ;;  %vm243_vm1 = vcmp.lt.s32.totalorder %v240_v16, %v242_v17  ;;  %s680_s0 = scalar_lea.hbm %s679_s13, 2  ;;  %p685_p0 = scmp.lt.s32.totalorder %s679_s13, %s895_s5 }
  0x1e   : > { %275 = vmatpush.bf16.msra.mxu0 %v589_v1  ;;  %354 = vmatpush.bf16.msra.mxu1 %v597_v4  ;;  %v643_v11 = vld [vmem:[%s215_s16] ss:$0 sm:$0xff]  ;;  %v541_v21 = vsel %vm243_vm1, 1.0, %v731_v20  ;;  %s206_s16 = sand.u32 1, %s720_s23   ;;  %p681_p11 = scmp.ne.s32.totalorder %s679_s13, %s680_s0 }
  0x1f   : > { %s539_s26 = sshll.u32 %s206_s16, 1  ;;  %s452_s12 = scalar_lea.sflag [#allocation5], %s206_s16 }
  0x20   : > { %s208_s9 = scalar_lea.vmem [#allocation4], %s539_s26  ;;  %p682_p12 = pnand %p681_p11, %p803_p5 }
  0x21   : > { %550 = vmatmul.msk.bf16.vlgmr.msra.gmra.mxu0 %vm264_vm0, %v827_v2  ;;  %s464_s10 = sshll.u32 %s208_s9, 4  ;;  %p686_p1 = scmp.lt.s32.totalorder %s684_s17, %s680_s0  ;;  %s465_s10 = int_to_ptr.vmem [resolvable:$true] %s464_s10 }
  0x22   : > { %355 = vmatpush.bf16.msra.mxu1 %v596_v5  ;;  %p683_p13 = pneg %p682_p12 }
  0x23   : > { %p687_p2 = por %p686_p1, %p685_p0 }
  0x25   : > { %250 = vperm.xlu0 %641, %v541_v21   ;;  %p688_p3 = pnand %p687_p2, %p683_p13 }
  0x26   : > { %356 = vmatpush.bf16.msra.mxu1 %v595_v6  ;;  %v411_v6 = vsel %vm410_vm12, %v827_v2, 0 }
  0x27   : > { %420 = vmatpush.bf16.msra.mxu2 %v411_v6 }
  0x2a   : > { %357 = vmatpush.bf16.msra.mxu1 %v594_v7 }
  0x2e   : > { %358 = vmatpush.bf16.msra.mxu1 %v593_v8 }
  0x32   : > { %359 = vmatpush.bf16.msra.mxu1 %v592_v9 }
  0x36   : > { %360 = vmatpush.bf16.msra.mxu1 %v591_v10 }
  0x97   : > { %v251_v35 = vpop.permute.xlu0 %250 }
  0x98   : > { %vm366_vm6 = vcmp.gt.f32.partialorder %v251_v35, 0.0 }
  0x9e   : > { %v277_v13 = vpop.f32.mrf.mxu0 }
  0x9f   : > { %v284_v14 = vadd.f32 %v643_v11, %v277_v13 }
  0xa1   : > { %v551_v18 = vmul.f32 -1.442695, %v284_v14 }
  0xa3   : > { %644 = vpow2.f32 %v551_v18 }
  0xa6   : > { %v279_v19 = vpop.f32.mrf.mxu0 }
  0xa9   : > { %v645_v22 = vpop.eup %644 }
  0xaa   : > { %v288_v23 = vadd.f32 1.0, %v645_v22 }
  0xac   : > { %646 = vrcp.f32 %v288_v23  ;;  %v300_v27 = vand.u32 2147483648, %v288_v23  ;;  %v298_v29 = vand.u32 2147483647, %v288_v23  ;;  %vm294_vm3 = vweird.f32 %v288_v23 }
  0xae   : > { %v301_v31 = vor.u32 1.1754944e-38, %v300_v27  ;;  %vm299_vm5 = vcmp.eq.f32.partialorder %v298_v29, 8.507059e+37 }
  0xb2   : > { %v647_v24 = vpop.eup %646 }
  0xb3   : > { %v290_v25 = vmul.f32 %v647_v24, %v288_v23  ;;  %vm295_vm2 = vweird.f32 %v647_v24 }
  0xb4   : > { %vm296_vm4 = vmor %vm294_vm3, %vm295_vm2 }
  0xb5   : > { %v291_v26 = vsub.f32 1.0, %v290_v25 }
  0xb7   : > { %v292_v28 = vmul.f32 %v647_v24, %v291_v26 }
  0xb9   : > { %v293_v30 = vadd.f32 %v647_v24, %v292_v28 }
  0xbb   : > { %v297_v32 = vsel %vm296_vm4, %v647_v24, %v293_v30 }
  0xbc   : > { %v302_v33 = vsel %vm299_vm5, %v301_v31, %v297_v32 }
  0xbd   : > { %v304_v34 = vpack.c.bf16 %v302_v33, %v302_v33 }
  0xbf   : > { %361 = vmatmul.bf16.vlgmr.msra.gmra.mxu1 %v304_v34 }
 0x13c   : > { %v362_v36 = vpop.f32.mrf.mxu1 }
 0x13d   : > { %v369_v37 = vsel %vm366_vm6, %v362_v36, -1e+30 }
 0x13e   : > { %v371_v38 = vsel %vm370_vm7, %v369_v37, -inf }
 0x13f   : > { %v372_v39 = vrot.slane %v371_v38, 4 }
 0x141   : > { %v373_v40 = vmax.f32 %v371_v38, %v372_v39 }
 0x143   : > { %v374_v41 = vrot.slane %v373_v40, 2 }
 0x144   : > { %v364_v42 = vpop.f32.mrf.mxu1 }
 0x145   : > { %v375_v43 = vmax.f32 %v373_v40, %v374_v41 }
 0x147   : > { %v376_v44 = vrot.slane %v375_v43, 1 }
 0x149   : > { %v377_v45 = vmax.f32 %v375_v43, %v376_v44 }
 0x14b   : > { %v378_v46 = vsub.f32 %v369_v37, %v377_v45 }
 0x14d   : > { %v379_v47 = vmul.f32 1.442695, %v378_v46 }
 0x14f   : > { %648 = vpow2.f32 %v379_v47 }
 0x155   : > { %v649_v48 = vpop.eup %648 }
 0x156   : > { %v381_v49 = vmul.f32 %v649_v48, %v251_v35 }
 0x158   : > { %v382_v50 = vsel %vm370_vm7, %v381_v49, 0.0  ;;  %v389_v51 = vpack.c.bf16 %v381_v49, %v381_v49 }
 0x159   : > { %v383_v52 = vrot.slane %v382_v50, 4 }
 0x15a   : > { %390 = vxpose.xlu0.c.b16.start.end [1/1] (short) (narrow) %v389_v51, 16 }
 0x15b   : > { %v384_v53 = vadd.f32 %v383_v52, %v382_v50 }
 0x15d   : > { %v385_v54 = vrot.slane %v384_v53, 2 }
 0x15f   : > { %v386_v55 = vadd.f32 %v385_v54, %v384_v53 }
 0x161   : > { %v387_v56 = vrot.slane %v386_v55, 1 }
 0x163   : > { %v388_v57 = vadd.f32 %v387_v56, %v386_v55 }
 0x165   : > { %v426_v58 = vmax.f32 %v388_v57, 1e-30 }
 0x167   : > { %650 = vrcp.f32 %v426_v58  ;;  %v438_v62 = vand.u32 2147483648, %v426_v58  ;;  %v436_v0 = vand.u32 2147483647, %v426_v58  ;;  %vm432_vm9 = vweird.f32 %v426_v58 }
 0x169   : > { %v439_v3 = vor.u32 1.1754944e-38, %v438_v62  ;;  %vm437_vm11 = vcmp.eq.f32.partialorder %v436_v0, 8.507059e+37 }
 0x16d   : > { %v651_v59 = vpop.eup %650 }
 0x16e   : > { %v428_v60 = vmul.f32 %v651_v59, %v426_v58  ;;  %vm433_vm8 = vweird.f32 %v651_v59 }
 0x16f   : > { %vm434_vm10 = vmor %vm432_vm9, %vm433_vm8 }
 0x170   : > { %v429_v61 = vsub.f32 1.0, %v428_v60 }
 0x172   : > { %v430_v63 = vmul.f32 %v651_v59, %v429_v61 }
 0x174   : > { %v431_v1 = vadd.f32 %v651_v59, %v430_v63 }
 0x176   : > { %v435_v4 = vsel %vm434_vm10, %v651_v59, %v431_v1 }
 0x177   : > { %v440_v5 = vsel %vm437_vm11, %v439_v3, %v435_v4 }
 0x178   : > { %446 = vperm.xlu1 %642, %v440_v5  }
 0x1ea   : > { %v447_v8 = vpop.permute.xlu1 %446 }
 0x206   : > { %v398_v7 = vpop.trf.xlu0 }
 0x207   : > { %584 = vmatmul.msk.bf16.vlgmr.msra.gmra.mxu2 %vm406_vm13, %v398_v7 }
 0x28a   : > { %v422_v9 = vpop.f32.mrf.mxu2 }
 0x28b   : > { %v448_v10 = vmul.f32 %v447_v8, %v422_v9 }
 0x28d   : > { %450 = vst.msk [vmem:[%s208_s9] sm:$0x3] %vm449_vm14, %v448_v10 }
 0x28e   : > { %691 = shalt.err (!%p688_p3)
}
 0x28f   : > { %599 = dma.vmem_to_hbm [thread:$0]  (%p803_p5), %s465_s10, 32, %s467_s11, %s452_s12  }
 0x292   : > { %v424_v2 = vpop.f32.mrf.mxu2 }
 0x293 PF: > { %p605_p4 = scmp.ge.s32.totalorder %s728_s25, 2  ;;  %s478_s20 = sand.u32 1, %s716_s22  }
 0x294   : > { %s479_s16 = scalar_lea.sflag [#allocation5], %s478_s20 }
 0x295   : > { %p602_p7 = pnand %p605_p4, %p807_p6 }
 0x297   : > { %p603_p8 = pneg %p602_p7 }
 0x299   : > { %711 = dma.done.wait (%p603_p8), %s479_s16, 32  }
 0x29a   : > { %713 = vsyncadd (%p603_p8), %s479_s16, 4294967264  ;;  %p23_p9 = scmp.ge.s32.totalorder %s790_s27, 4   ;;  %s898_s22 = smov %s720_s23 }
 0x29b   : > { %s899_s23 = smov %s724_s24  ;;  %s900_s24 = smov %s801_s30 }
 0x29c   : > { %s901_s25 = smov %s790_s27  ;;  %25 = sbr.rel (!%p23_p9) target bundleno = 9 (0x9), region = 74 }
 0x2a1   :  { %485 = vsyncpa [#allocation5], 1 }
 0x2a2   :  { %487 = vsyncpa [#allocation5 + $0x1], 1 }

</bundles_post_ra>
